<compile_context>
chip_gen: v6e
topology: v6e:2x2x1
jax: 0.10.0
libtpu: 0.0.40
codegen_flags: <defaults>
</compile_context>

<pallas_src>
import jax
import jax.numpy as jnp
from jax import lax
from jax.experimental import pallas as pl
from jax.experimental.pallas import tpu as pltpu


def _round_up(x, m):
    return ((x + m - 1) // m) * m


# ----------------------------------------------------------------------------
# Kernel: one grid step == one (t_block, b_tile) slab of the recurrence.
# ----------------------------------------------------------------------------
def _agru_seq_kernel(x_ref, a_ref, h0_ref, wx_ref, bx_ref, wh_ref, bhn_ref,
                     out_ref, h_sc, gi_sc):
    tb, bb, i_pad = x_ref.shape
    h_pad = h_sc.shape[-1]
    mm_dtype = wh_ref.dtype

    # (Re)initialize the carried hidden state at the start of each batch
    # tile's time sweep (grid = (batch, time), time is axis 1).
    @pl.when(pl.program_id(1) == 0)
    def _():
        h_sc[...] = h0_ref[...]

    # Hoisted x projection for the whole time block: one large, MXU-efficient
    # matmul, with the r/z biases (b_ih + b_hh) and b_in already folded in.
    x_flat = x_ref[...].reshape(tb * bb, i_pad)
    gi_sc[...] = (
        jnp.dot(x_flat, wx_ref[...], preferred_element_type=jnp.float32)
        + bx_ref[...]
    ).reshape(tb, bb, 3 * h_pad)

    # Hoist the b_hn broadcast out of the unrolled loop (no CSE otherwise).
    bhn = jnp.broadcast_to(bhn_ref[...], (bb, h_pad))

    def step(s, h):                                   # h: (bb, h_pad) f32
        gi = gi_sc[s]                                 # (bb, 3*h_pad) f32
        a = a_ref[s]                                  # (bb, 1)       f32

        # Single per-step MXU call: h @ [W_hr | W_hz | W_hn].
        gh = jnp.dot(h.astype(mm_dtype), wh_ref[...],
                     preferred_element_type=jnp.float32)

        r = jax.nn.sigmoid(gi[:, :h_pad] + gh[:, :h_pad])
        z = jax.nn.sigmoid(gi[:, h_pad:2 * h_pad] + gh[:, h_pad:2 * h_pad])
        n = jnp.tanh(gi[:, 2 * h_pad:] + r * (gh[:, 2 * h_pad:] + bhn))

        # out = (1-a)*h + a*((1-z)*n + z*h)  ==  h + a*(1-z)*(n-h)
        h_new = h + a * (1.0 - z) * (n - h)

        out_ref[s] = h_new.astype(out_ref.dtype)
        return h_new

    h_sc[...] = lax.fori_loop(0, tb, step, h_sc[...], unroll=min(tb, 8))


# ----------------------------------------------------------------------------
# One-time parameter preparation (torch GRUCell layout -> packed, padded, T).
# ----------------------------------------------------------------------------
def prepare_agru_params(w_ih, w_hh, b_ih, b_hh, *, matmul_dtype=jnp.float32):
    """w_ih: (3H, I), w_hh: (3H, H), b_*: (3H,) in torch gate order (r, z, n)."""
    w_ih = jnp.asarray(w_ih, jnp.float32)
    w_hh = jnp.asarray(w_hh, jnp.float32)
    b_ih = jnp.asarray(b_ih, jnp.float32)
    b_hh = jnp.asarray(b_hh, jnp.float32)

    h3, i_sz = w_ih.shape
    h_sz = h3 // 3
    i_pad = _round_up(i_sz, 128)
    h_pad = _round_up(h_sz, 128)

    def gate(w, g):                                   # -> (in_dim, H)
        return w[g * h_sz:(g + 1) * h_sz, :].T

    # x-side: [W_ir | W_iz | W_in], each gate lane-aligned to a h_pad column
    # block; r/z biases (b_ih + b_hh) and b_in folded in.
    wx = jnp.zeros((i_pad, 3 * h_pad), jnp.float32)
    wh = jnp.zeros((h_pad, 3 * h_pad), jnp.float32)
    bx = jnp.zeros((1, 3 * h_pad), jnp.float32)
    bhn = jnp.zeros((1, h_pad), jnp.float32)
    for g in range(3):
        wx = wx.at[:i_sz, g * h_pad:g * h_pad + h_sz].set(gate(w_ih, g))
        wh = wh.at[:h_sz, g * h_pad:g * h_pad + h_sz].set(gate(w_hh, g))
    bx = bx.at[0, 0:h_sz].set(b_ih[:h_sz] + b_hh[:h_sz])
    bx = bx.at[0, h_pad:h_pad + h_sz].set(b_ih[h_sz:2 * h_sz] + b_hh[h_sz:2 * h_sz])
    bx = bx.at[0, 2 * h_pad:2 * h_pad + h_sz].set(b_ih[2 * h_sz:])
    bhn = bhn.at[0, :h_sz].set(b_hh[2 * h_sz:])     # stays inside r * (.)

    return dict(
        wx=wx.astype(matmul_dtype), bx=bx,
        wh=wh.astype(matmul_dtype), bhn=bhn,
        input_size=i_sz, hidden_size=h_sz, i_pad=i_pad, h_pad=h_pad,
        matmul_dtype=matmul_dtype,
    )


# ----------------------------------------------------------------------------
# Fused-recurrence wrapper: all T steps in a single pallas_call.
# ----------------------------------------------------------------------------
def agru_sequence(xs, h0, att, params, *, t_block=32, b_block=None,
                  vmem_limit_bytes=None):
    """xs: (T, B, I), h0: (B, H), att: (T, B) or (T, B, 1). Returns (T, B, H)."""
    t_len, b_sz, i_sz = xs.shape
    h_sz = h0.shape[-1]
    assert i_sz == params["input_size"] and h_sz == params["hidden_size"]
    i_pad, h_pad = params["i_pad"], params["h_pad"]
    mm_dtype = params["matmul_dtype"]

    tb = max(1, min(t_block, t_len))
    t_pad = _round_up(t_len, tb)          # pad T; padded steps are no-ops

    bb = b_sz if b_block is None else b_block
    assert b_sz % bb == 0 and (bb % 8 == 0 or bb == b_sz)

    # One-time (per call) padding / casts, outside the recurrence.
    xs_p = jnp.zeros((t_pad, b_sz, i_pad), mm_dtype)
    xs_p = xs_p.at[:t_len, :, :i_sz].set(xs.astype(mm_dtype))
    att3 = jnp.zeros((t_pad, b_sz, 1), jnp.float32)
    att3 = att3.at[:t_len].set(jnp.reshape(att, (t_len, b_sz, 1)).astype(jnp.float32))
    h0_p = jnp.zeros((b_sz, h_pad), jnp.float32)
    h0_p = h0_p.at[:, :h_sz].set(h0.astype(jnp.float32))

    # Explicit VMEM budget (matters on v7x: 64 MiB physical per TC).
    w_item = jnp.dtype(mm_dtype).itemsize
    resident = (i_pad * 3 * h_pad + h_pad * 3 * h_pad) * w_item \
        + (3 * h_pad + h_pad) * 4
    per_block = (2 * tb * bb * i_pad * w_item      # double-buffered x slab
                 + 2 * tb * bb * 4                 # att slab
                 + 2 * tb * bb * h_pad * 4         # out slab
                 + tb * bb * 3 * h_pad * 4         # gi scratch
                 + bb * h_pad * 4                  # carried h scratch
                 + 2 * bb * h_pad * 4)             # h0
    if vmem_limit_bytes is None:
        vmem_limit_bytes = int(min(120 * 2**20,
                                   max(32 * 2**20, 2 * (resident + per_block))))

    const2 = lambda b, t: (0, 0)
    grid_spec = pltpu.PrefetchScalarGridSpec(
        num_scalar_prefetch=0,
        grid=(b_sz // bb, t_pad // tb),
        in_specs=[
            pl.BlockSpec((tb, bb, i_pad), lambda b, t: (t, b, 0)),   # x slab
            pl.BlockSpec((tb, bb, 1), lambda b, t: (t, b, 0)),       # att slab
            pl.BlockSpec((bb, h_pad), lambda b, t: (b, 0)),          # h0
            pl.BlockSpec(params["wx"].shape, const2),                # resident
            pl.BlockSpec(params["bx"].shape, const2),
            pl.BlockSpec(params["wh"].shape, const2),
            pl.BlockSpec(params["bhn"].shape, const2),
        ],
        out_specs=pl.BlockSpec((tb, bb, h_pad), lambda b, t: (t, b, 0)),
        scratch_shapes=[
            pltpu.VMEM((bb, h_pad), jnp.float32),          # carried hidden
            pltpu.VMEM((tb, bb, 3 * h_pad), jnp.float32),  # hoisted x gates
        ],
    )

    out_padded = pl.pallas_call(
        _agru_seq_kernel,
        out_shape=jax.ShapeDtypeStruct((t_pad, b_sz, h_pad), jnp.float32),
        grid_spec=grid_spec,
        compiler_params=pltpu.CompilerParams(
            dimension_semantics=("parallel", "arbitrary"),
            vmem_limit_bytes=vmem_limit_bytes),
    )(xs_p, att3, h0_p,
      params["wx"], params["bx"], params["wh"], params["bhn"])

    return out_padded[:t_len, :, :h_sz]


# ----------------------------------------------------------------------------
# Single-step AGRUCell: exactly the PyTorch module's forward(input, hidden, w).
# ----------------------------------------------------------------------------
def agru_cell(x, h, att_weight, params):
    """hidden = (1 - w) * hidden + w * GRUCell(input, hidden);  w = weight.view(-1, 1)."""
    out = agru_sequence(x[None, ...], h,
                        jnp.reshape(att_weight, (1, -1)), params, t_block=1)
    return out[0]


# ----------------------------------------------------------------------------
# Pure-JAX references (torch GRUCell semantics).
# ----------------------------------------------------------------------------
def _gru_ref(x, h, w_ih, w_hh, b_ih, b_hh):
    gi = x @ w_ih.T + b_ih
    gh = h @ w_hh.T + b_hh
    hs = h.shape[-1]
    r = jax.nn.sigmoid(gi[:, :hs] + gh[:, :hs])
    z = jax.nn.sigmoid(gi[:, hs:2 * hs] + gh[:, hs:2 * hs])
    n = jnp.tanh(gi[:, 2 * hs:] + r * gh[:, 2 * hs:])
    return (1 - z) * n + z * h


def _agru_ref_step(x, h, a, w_ih, w_hh, b_ih, b_hh):
    h_o = _gru_ref(x, h, w_ih, w_hh, b_ih, b_hh)
    a = a.reshape(-1, 1)
    return (1 - a) * h + a * h_o


if __name__ == "__main__":
    INPUT_SIZE = 32
    HIDDEN_SIZE = 32
    BATCH = 8
    SEQ = 16
    SEQ_ODD = 13            # exercises the pad-T-to-multiple-of-t_block path

    key = jax.random.PRNGKey(0)
    kx, kh, ka, k1, k2, k3, k4, kxs, kas = jax.random.split(key, 9)

    bound = 1.0 / (HIDDEN_SIZE ** 0.5)
    w_ih = jax.random.uniform(k1, (3 * HIDDEN_SIZE, INPUT_SIZE), jnp.float32, -bound, bound)
    w_hh = jax.random.uniform(k2, (3 * HIDDEN_SIZE, HIDDEN_SIZE), jnp.float32, -bound, bound)
    b_ih = jax.random.uniform(k3, (3 * HIDDEN_SIZE,), jnp.float32, -bound, bound)
    b_hh = jax.random.uniform(k4, (3 * HIDDEN_SIZE,), jnp.float32, -bound, bound)

    # One-time weight packing (hoisted out of any per-step path).
    params = prepare_agru_params(w_ih, w_hh, b_ih, b_hh, matmul_dtype=jnp.float32)

    # --- single-step forward, matching the PyTorch module ---
    x = jax.random.normal(kx, (BATCH, INPUT_SIZE), jnp.float32)
    h = jax.random.normal(kh, (BATCH, HIDDEN_SIZE), jnp.float32)
    att = jax.random.uniform(ka, (BATCH,), jnp.float32)

    out = agru_cell(x, h, att, params)
    jax.block_until_ready(out)
    expected = _agru_ref_step(x, h, att, w_ih, w_hh, b_ih, b_hh)
    assert out.shape == (BATCH, HIDDEN_SIZE)
    assert jnp.allclose(out, expected, atol=1e-4, rtol=1e-4), \
        float(jnp.max(jnp.abs(out - expected)))

    # --- fused recurrence: all SEQ steps inside one pallas_call ---
    xs = jax.random.normal(kxs, (SEQ, BATCH, INPUT_SIZE), jnp.float32)
    atts = jax.random.uniform(kas, (SEQ, BATCH), jnp.float32)
    hs = agru_sequence(xs, h, atts, params, t_block=8)
    jax.block_until_ready(hs)

    h_ref = h
    ref_outs = []
    for t in range(SEQ):
        h_ref = _agru_ref_step(xs[t], h_ref, atts[t], w_ih, w_hh, b_ih, b_hh)
        ref_outs.append(h_ref)
    ref_outs = jnp.stack(ref_outs)
    assert hs.shape == (SEQ, BATCH, HIDDEN_SIZE)
    assert jnp.allclose(hs, ref_outs, atol=1e-4, rtol=1e-4), \
        float(jnp.max(jnp.abs(hs - ref_outs)))

    # --- odd-length sequence: T padded to a multiple of t_block inside ---
    hs_odd = agru_sequence(xs[:SEQ_ODD], h, atts[:SEQ_ODD], params, t_block=8)
    jax.block_until_ready(hs_odd)
    assert hs_odd.shape == (SEQ_ODD, BATCH, HIDDEN_SIZE)
    assert jnp.allclose(hs_odd, ref_outs[:SEQ_ODD], atol=1e-4, rtol=1e-4), \
        float(jnp.max(jnp.abs(hs_odd - ref_outs[:SEQ_ODD])))

    print("KERNEL_OK")
</pallas_src>

<mosaic_0001>
module attributes {stable_mosaic.version = 11 : i64} {
  func.func @_agru_seq_kernel(%arg0: i32, %arg1: i32, %arg2: memref<1x8x128xf32, #tpu.memory_space<vmem>>, %arg3: memref<1x8x1xf32, #tpu.memory_space<vmem>>, %arg4: memref<8x128xf32, #tpu.memory_space<vmem>>, %arg5: memref<128x384xf32, #tpu.memory_space<vmem>>, %arg6: memref<1x384xf32, #tpu.memory_space<vmem>>, %arg7: memref<128x384xf32, #tpu.memory_space<vmem>>, %arg8: memref<1x128xf32, #tpu.memory_space<vmem>>, %arg9: memref<1x8x128xf32, #tpu.memory_space<vmem>>, %arg10: memref<8x128xf32, #tpu.memory_space<vmem>>, %arg11: memref<1x8x384xf32, #tpu.memory_space<vmem>>) attributes {dimension_semantics = [#tpu.dimension_semantics<parallel>, #tpu.dimension_semantics<arbitrary>], iteration_bounds = array<i64: 1, 1>, scalar_prefetch = 0 : i64, scratch_operands = 2 : i64, tpu.core_type = #tpu.core_type<tc>, window_params = [{transform_indices = @transform_0, window_bounds = array<i64: 1, 8, 128>}, {transform_indices = @transform_1, window_bounds = array<i64: 1, 8, 1>}, {transform_indices = @transform_2, window_bounds = array<i64: 8, 128>}, {pipeline_mode = #tpu.pipeline_mode<synchronous>, transform_indices = @transform_3, window_bounds = array<i64: 128, 384>}, {pipeline_mode = #tpu.pipeline_mode<synchronous>, transform_indices = @transform_4, window_bounds = array<i64: 1, 384>}, {pipeline_mode = #tpu.pipeline_mode<synchronous>, transform_indices = @transform_5, window_bounds = array<i64: 128, 384>}, {pipeline_mode = #tpu.pipeline_mode<synchronous>, transform_indices = @transform_6, window_bounds = array<i64: 1, 128>}, {transform_indices = @transform_7, window_bounds = array<i64: 1, 8, 128>}]} {
    %c0_i32 = arith.constant 0 : i32
    %0 = arith.cmpi eq, %arg1, %c0_i32 : i32
    %1 = arith.extui %0 : i1 to i32
    %c0_i32_0 = arith.constant 0 : i32
    %2 = arith.cmpi ne, %1, %c0_i32_0 : i32
    scf.if %2 {
      %c0_29 = arith.constant 0 : index
      %c0_30 = arith.constant 0 : index
      %58 = vector.load %arg4[%c0_29, %c0_30] : memref<8x128xf32, #tpu.memory_space<vmem>>, vector<8x128xf32>
      %c0_31 = arith.constant 0 : index
      %c0_32 = arith.constant 0 : index
      %59 = vector.load %arg10[%c0_31, %c0_32] : memref<8x128xf32, #tpu.memory_space<vmem>>, vector<8x128xf32>
      tpu.vector_store %arg10[%c0_31, %c0_32], %58 {strides = array<i32>} : memref<8x128xf32, #tpu.memory_space<vmem>>, vector<8x128xf32>,
    } else {
    }
    %c0 = arith.constant 0 : index
    %c0_1 = arith.constant 0 : index
    %c0_2 = arith.constant 0 : index
    %3 = vector.load %arg2[%c0, %c0_1, %c0_2] : memref<1x8x128xf32, #tpu.memory_space<vmem>>, vector<1x8x128xf32>
    %4 = vector.shape_cast %3 : vector<1x8x128xf32> to vector<8x128xf32>
    %c0_3 = arith.constant 0 : index
    %c0_4 = arith.constant 0 : index
    %5 = vector.load %arg5[%c0_3, %c0_4] : memref<128x384xf32, #tpu.memory_space<vmem>>, vector<128x384xf32>
    %cst = arith.constant dense<0.000000e+00> : vector<8x384xf32>
    %6 = tpu.matmul %4, %5, %cst {dimension_numbers = #tpu.dot_dimension_numbers<[1], [0], [0], [1], [0, 0, 1, 1], [], []>} : vector<8x128xf32>, vector<128x384xf32>, vector<8x384xf32> -> vector<8x384xf32>
    %c0_5 = arith.constant 0 : index
    %c0_6 = arith.constant 0 : index
    %7 = vector.load %arg6[%c0_5, %c0_6] : memref<1x384xf32, #tpu.memory_space<vmem>>, vector<1x384xf32>
    %8 = vector.broadcast %7 : vector<1x384xf32> to vector<8x384xf32>
    %9 = arith.addf %6, %8 : vector<8x384xf32>
    %10 = vector.shape_cast %9 : vector<8x384xf32> to vector<1x8x384xf32>
    %c0_7 = arith.constant 0 : index
    %c0_8 = arith.constant 0 : index
    %c0_9 = arith.constant 0 : index
    %11 = vector.load %arg11[%c0_7, %c0_8, %c0_9] : memref<1x8x384xf32, #tpu.memory_space<vmem>>, vector<1x8x384xf32>
    tpu.vector_store %arg11[%c0_7, %c0_8, %c0_9], %10 {strides = array<i32>} : memref<1x8x384xf32, #tpu.memory_space<vmem>>, vector<1x8x384xf32>,
    %c0_10 = arith.constant 0 : index
    %c0_11 = arith.constant 0 : index
    %12 = vector.load %arg8[%c0_10, %c0_11] : memref<1x128xf32, #tpu.memory_space<vmem>>, vector<1x128xf32>
    %13 = vector.shape_cast %12 : vector<1x128xf32> to vector<1x128xf32>
    %14 = vector.broadcast %13 : vector<1x128xf32> to vector<8x128xf32>
    %c0_12 = arith.constant 0 : index
    %c0_13 = arith.constant 0 : index
    %15 = vector.load %arg10[%c0_12, %c0_13] : memref<8x128xf32, #tpu.memory_space<vmem>>, vector<8x128xf32>
    %c0_i32_14 = arith.constant 0 : i32
    %16 = arith.index_cast %c0_i32_14 : i32 to index
    %c0_15 = arith.constant 0 : index
    %c0_16 = arith.constant 0 : index
    %17 = vector.load %arg11[%16, %c0_15, %c0_16] : memref<1x8x384xf32, #tpu.memory_space<vmem>>, vector<1x8x384xf32>
    %18 = vector.shape_cast %17 : vector<1x8x384xf32> to vector<8x384xf32>
    %19 = arith.index_cast %c0_i32_14 : i32 to index
    %c0_17 = arith.constant 0 : index
    %c0_18 = arith.constant 0 : index
    %20 = vector.load %arg3[%19, %c0_17, %c0_18] : memref<1x8x1xf32, #tpu.memory_space<vmem>>, vector<1x8x1xf32>
    %21 = vector.shape_cast %20 : vector<1x8x1xf32> to vector<8x1xf32>
    %c0_19 = arith.constant 0 : index
    %c0_20 = arith.constant 0 : index
    %22 = vector.load %arg7[%c0_19, %c0_20] : memref<128x384xf32, #tpu.memory_space<vmem>>, vector<128x384xf32>
    %cst_21 = arith.constant dense<0.000000e+00> : vector<8x384xf32>
    %23 = tpu.matmul %15, %22, %cst_21 {dimension_numbers = #tpu.dot_dimension_numbers<[1], [0], [0], [1], [0, 0, 1, 1], [], []>} : vector<8x128xf32>, vector<128x384xf32>, vector<8x384xf32> -> vector<8x384xf32>
    %24 = vector.extract_strided_slice %18 {offsets = [0, 0], sizes = [8, 128], strides = [1, 1]} : vector<8x384xf32> to vector<8x128xf32>
    %25 = vector.extract_strided_slice %23 {offsets = [0, 0], sizes = [8, 128], strides = [1, 1]} : vector<8x384xf32> to vector<8x128xf32>
    %26 = arith.addf %24, %25 : vector<8x128xf32>
    %27 = arith.negf %26 : vector<8x128xf32>
    %28 = math.exp %27 : vector<8x128xf32>
    %cst_22 = arith.constant 1.000000e+00 : f32
    %29 = vector.broadcast %cst_22 : f32 to vector<8x128xf32>
    %30 = arith.addf %29, %28 : vector<8x128xf32>
    %31 = arith.divf %29, %30 : vector<8x128xf32>
    %32 = vector.extract_strided_slice %18 {offsets = [0, 128], sizes = [8, 128], strides = [1, 1]} : vector<8x384xf32> to vector<8x128xf32>
    %33 = vector.extract_strided_slice %23 {offsets = [0, 128], sizes = [8, 128], strides = [1, 1]} : vector<8x384xf32> to vector<8x128xf32>
    %34 = arith.addf %32, %33 : vector<8x128xf32>
    %35 = arith.negf %34 : vector<8x128xf32>
    %36 = math.exp %35 : vector<8x128xf32>
    %cst_23 = arith.constant 1.000000e+00 : f32
    %37 = vector.broadcast %cst_23 : f32 to vector<8x128xf32>
    %38 = arith.addf %37, %36 : vector<8x128xf32>
    %39 = arith.divf %37, %38 : vector<8x128xf32>
    %40 = vector.extract_strided_slice %18 {offsets = [0, 256], sizes = [8, 128], strides = [1, 1]} : vector<8x384xf32> to vector<8x128xf32>
    %41 = vector.extract_strided_slice %23 {offsets = [0, 256], sizes = [8, 128], strides = [1, 1]} : vector<8x384xf32> to vector<8x128xf32>
    %42 = arith.addf %41, %14 : vector<8x128xf32>
    %43 = arith.mulf %31, %42 : vector<8x128xf32>
    %44 = arith.addf %40, %43 : vector<8x128xf32>
    %45 = math.tanh %44 : vector<8x128xf32>
    %cst_24 = arith.constant 1.000000e+00 : f32
    %46 = vector.broadcast %cst_24 : f32 to vector<8x128xf32>
    %47 = arith.subf %46, %39 : vector<8x128xf32>
    %48 = vector.broadcast %21 : vector<8x1xf32> to vector<8x128xf32>
    %49 = arith.mulf %48, %47 : vector<8x128xf32>
    %50 = arith.subf %45, %15 : vector<8x128xf32>
    %51 = arith.mulf %49, %50 : vector<8x128xf32>
    %52 = arith.addf %15, %51 : vector<8x128xf32>
    %53 = arith.index_cast %c0_i32_14 : i32 to index
    %c0_25 = arith.constant 0 : index
    %c0_26 = arith.constant 0 : index
    %54 = vector.load %arg9[%53, %c0_25, %c0_26] : memref<1x8x128xf32, #tpu.memory_space<vmem>>, vector<1x8x128xf32>
    %55 = vector.shape_cast %54 : vector<1x8x128xf32> to vector<8x128xf32>
    %56 = vector.shape_cast %52 : vector<8x128xf32> to vector<1x8x128xf32>
    tpu.vector_store %arg9[%53, %c0_25, %c0_26], %56 {strides = array<i32>} : memref<1x8x128xf32, #tpu.memory_space<vmem>>, vector<1x8x128xf32>,
    %c1_i32 = arith.constant 1 : i32
    %c0_27 = arith.constant 0 : index
    %c0_28 = arith.constant 0 : index
    %57 = vector.load %arg10[%c0_27, %c0_28] : memref<8x128xf32, #tpu.memory_space<vmem>>, vector<8x128xf32>
    tpu.vector_store %arg10[%c0_27, %c0_28], %52 {strides = array<i32>} : memref<8x128xf32, #tpu.memory_space<vmem>>, vector<8x128xf32>,
    return
  }
  func.func @transform_0(%arg0: i32, %arg1: i32) -> (i32, i32, i32) {
    %c0_i32 = arith.constant 0 : i32
    %c0_i32_0 = arith.constant 0 : i32
    return %arg1, %arg0, %c0_i32 : i32, i32, i32
  }
  func.func @transform_1(%arg0: i32, %arg1: i32) -> (i32, i32, i32) {
    %c0_i32 = arith.constant 0 : i32
    %c0_i32_0 = arith.constant 0 : i32
    return %arg1, %arg0, %c0_i32 : i32, i32, i32
  }
  func.func @transform_2(%arg0: i32, %arg1: i32) -> (i32, i32) {
    %c0_i32 = arith.constant 0 : i32
    %c0_i32_0 = arith.constant 0 : i32
    return %arg0, %c0_i32 : i32, i32
  }
  func.func @transform_3(%arg0: i32, %arg1: i32) -> (i32, i32) {
    %c0_i32 = arith.constant 0 : i32
    %c0_i32_0 = arith.constant 0 : i32
    %c0_i32_1 = arith.constant 0 : i32
    return %c0_i32, %c0_i32_0 : i32, i32
  }
  func.func @transform_4(%arg0: i32, %arg1: i32) -> (i32, i32) {
    %c0_i32 = arith.constant 0 : i32
    %c0_i32_0 = arith.constant 0 : i32
    %c0_i32_1 = arith.constant 0 : i32
    return %c0_i32, %c0_i32_0 : i32, i32
  }
  func.func @transform_5(%arg0: i32, %arg1: i32) -> (i32, i32) {
    %c0_i32 = arith.constant 0 : i32
    %c0_i32_0 = arith.constant 0 : i32
    %c0_i32_1 = arith.constant 0 : i32
    return %c0_i32, %c0_i32_0 : i32, i32
  }
  func.func @transform_6(%arg0: i32, %arg1: i32) -> (i32, i32) {
    %c0_i32 = arith.constant 0 : i32
    %c0_i32_0 = arith.constant 0 : i32
    %c0_i32_1 = arith.constant 0 : i32
    return %c0_i32, %c0_i32_0 : i32, i32
  }
  func.func @transform_7(%arg0: i32, %arg1: i32) -> (i32, i32, i32) {
    %c0_i32 = arith.constant 0 : i32
    %c0_i32_0 = arith.constant 0 : i32
    return %arg1, %arg0, %c0_i32 : i32, i32, i32
  }
}

</mosaic_0001>

<bundles_post_ra>
// kernel: tpu_custom_call.1
= control target key start
LH: loop header
LB: loop body
LE: loop exit
PB: predicated region body
PF: predicated region fallthrough
CT: control target
= control target key end

     0   :  { %12 = vsyncpa [#allocation5], 0  ;;  %s859_s0 = inlined_call_operand.vmem [shape: f32[1,8,128], index: 0, kind: input, shape index: {}]   ;;  %s860_s1 = inlined_call_operand.vmem [shape: f32[1,8,1], index: 1, kind: input, shape index: {}]   ;;  %s861_s2 = inlined_call_operand.hbm [shape: f32[8,128], index: 2, kind: input, shape index: {}]   ;;  %s862_s3 = inlined_call_operand.hbm [shape: f32[128,384], index: 3, kind: input, shape index: {}]   ;;  %s863_s4 = inlined_call_operand.vmem [shape: f32[1,384], index: 4, kind: input, shape index: {}]   ;;  %s864_s5 = inlined_call_operand.hbm [shape: f32[128,384], index: 5, kind: input, shape index: {}]   ;;  %s865_s6 = inlined_call_operand.vmem [shape: f32[1,128], index: 6, kind: input, shape index: {}]   ;;  %s866_s7 = inlined_call_operand.hbm [shape: f32[1,8,128], index: 7, kind: output, shape index: {}]  }
   0x1   :  { %13 = vsyncpa [#allocation8], 0 }
   0x2   :  { %14 = vsyncpa [#allocation6], 0  ;;  %s742_s24 = smov [#allocation7]  }
   0x3   :  { %s34_s25 = sshll.u32 %s742_s24, 4  ;;  %s35_s25 = int_to_ptr.vmem [resolvable:$true] %s34_s25 }
   0x4   :  { %s664_s26 = scalar_lea.vmem %s35_s25, 6144  ;;  %p669_p1 = scmp.lt.s32.totalorder %s35_s25, %s35_s25 }
   0x5   :  { %p665_p0 = scmp.ne.s32.totalorder %s35_s25, %s664_s26  ;;  %p670_p2 = scmp.lt.s32.totalorder %s664_s26, %s664_s26 }
   0x7   :  { %p671_p3 = por %p670_p2, %p669_p1 }
   0x9   :  { %p672_p4 = pnand %p671_p3, %p665_p0 }
   0xb   :  { %675 = shalt.err (!%p672_p4)
}
   0xc   :  { %s743_s27 = smov 384   ;;  %s744_s28 = smov 24  }
   0xd   :  { %40 = dma.hbm_to_vmem [thread:$0]  %s862_s3, 6144, %s35_s25, [#allocation8], %s743_s27, %s743_s27, %s744_s28  }
   0xe   :  { %s745_s8 = smov [#allocation4]   ;;  %s746_s10 = smov [#allocation9]  }
   0xf   :  { %s25_s9 = sshll.u32 %s745_s8, 4  ;;  %s48_s11 = sshll.u32 %s746_s10, 4  ;;  %s26_s9 = int_to_ptr.vmem [resolvable:$true] %s25_s9  ;;  %s49_s11 = int_to_ptr.vmem [resolvable:$true] %s48_s11 }
  0x10   :  { %s684_s12 = scalar_lea.vmem %s26_s9, 128  ;;  %p689_p6 = scmp.lt.s32.totalorder %s26_s9, %s26_s9 }
  0x11   :  { %p685_p5 = scmp.ne.s32.totalorder %s26_s9, %s684_s12  ;;  %p690_p7 = scmp.lt.s32.totalorder %s684_s12, %s684_s12 }
  0x13   :  { %p691_p8 = por %p690_p7, %p689_p6 }
  0x15   :  { %p692_p9 = pnand %p691_p8, %p685_p5 }
  0x17   :  { %695 = shalt.err (!%p692_p9)
}
  0x18   :  { %28 = dma.hbm_to_vmem [thread:$0]  %s861_s2, 128, %s26_s9, [#allocation5]  }
  0x19   :  { %s704_s15 = scalar_lea.vmem %s49_s11, 6144  ;;  %p709_p11 = scmp.lt.s32.totalorder %s49_s11, %s49_s11 }
  0x1a   :  { %p705_p10 = scmp.ne.s32.totalorder %s49_s11, %s704_s15  ;;  %p710_p12 = scmp.lt.s32.totalorder %s704_s15, %s704_s15 }
  0x1c   :  { %p711_p13 = por %p710_p12, %p709_p11 }
  0x1e   :  { %p712_p0 = pnand %p711_p13, %p705_p10 }
  0x20   :  { %715 = shalt.err (!%p712_p0)
}
  0x21   :  { %54 = dma.hbm_to_vmem [thread:$0]  %s864_s5, 6144, %s49_s11, [#allocation8], %s743_s27, %s743_s27, %s744_s28  }
  0x22   :  { %736 = dma.done.wait [#allocation5], 128  }
  0x23   :  { %737 = vsyncadd [#allocation5], 4294967168 }
  0x24   :  { %738 = dma.done.wait [#allocation8], 12288  }
  0x25   :  { %739 = vsyncadd [#allocation8], 4294955008  ;;  %v747_v0 = vmov 0.0   ;;  %vm748_vm0 = vmmov 0   ;;  %v749_v1 = vmov 0   ;;  %v119_v2 = vld [vmem:[#allocation7 + $0x170] sm:$0xff] }
  0x26   :  { %566 = vmatprep.subr.mxu1 %v747_v0  ;;  %202 = vmatprep.mubr.f32.mxu0 %v747_v0  ;;  %v118_v3 = vld [vmem:[#allocation7 + $0x168] sm:$0xff]  ;;  %v116_v4 = vld [vmem:[#allocation7 + $0x158] sm:$0xff]  ;;  %v115_v5 = vld [vmem:[#allocation7 + $0x150] sm:$0xff]  ;;  %s750_s20 = smov [#allocation10]  }
  0x27   :  { %598 = vmatprep.mubr.msk.f32.mxu1 %vm748_vm0, %v747_v0  ;;  %645 = vset.pattern.permute.xlu0 %v749_v1  ;;  %v113_v6 = vld [vmem:[#allocation7 + $0x140] sm:$0xff]  ;;  %v112_v7 = vld [vmem:[#allocation7 + $0x138] sm:$0xff]  ;;  %v110_v8 = vld [vmem:[#allocation7 + $0x128] sm:$0xff]  ;;  %s519_s21 = sshll.u32 %s750_s20, 4  ;;  %s520_s21 = int_to_ptr.vmem [resolvable:$true] %s519_s21 }
  0x28   :  { %138 = vmatprep.subr.mxu0 %v119_v2  ;;  %v109_v9 = vld [vmem:[#allocation7 + $0x120] sm:$0xff]  ;;  %v107_v10 = vld [vmem:[#allocation7 + $0x110] sm:$0xff]  ;;  %v106_v11 = vld [vmem:[#allocation7 + $0x108] sm:$0xff]  ;;  %p721_p2 = scmp.lt.s32.totalorder %s520_s21, %s520_s21 }
  0x29   :  { %139 = vmatpush1.msra.mxu0 %v118_v3  ;;  %v104_v12 = vld [vmem:[#allocation7 + $0xf8] sm:$0xff]  ;;  %v103_v13 = vld [vmem:[#allocation7 + $0xf0] sm:$0xff]  ;;  %v101_v14 = vld [vmem:[#allocation7 + $0xe0] sm:$0xff] }
  0x2a   :  { %140 = vmatprep.subr.mxu0 %v116_v4  ;;  %v120_v15 = vld [vmem:[#allocation7 + $0x178] sm:$0xff]  ;;  %v117_v17 = vld [vmem:[#allocation7 + $0x160] sm:$0xff]  ;;  %v98_v18 = vld [vmem:[#allocation7 + $0xc8] sm:$0xff] }
  0x2b   :  { %141 = vmatpush1.msra.mxu0 %v115_v5  ;;  %v100_v16 = vld [vmem:[#allocation7 + $0xd8] sm:$0xff]  ;;  %567 = vmatpush3.msra.mxu1 %v120_v15  ;;  %v114_v19 = vld [vmem:[#allocation7 + $0x148] sm:$0xff]  ;;  %v97_v20 = vld [vmem:[#allocation7 + $0xc0] sm:$0xff] }
  0x2c   :  { %142 = vmatprep.subr.mxu0 %v113_v6  ;;  %568 = vmatprep.subr.mxu1 %v747_v0  ;;  %v95_v21 = vld [vmem:[#allocation7 + $0xb0] sm:$0xff]  ;;  %v94_v23 = vld [vmem:[#allocation7 + $0xa8] sm:$0xff]  ;;  %v92_v24 = vld [vmem:[#allocation7 + $0x98] sm:$0xff] }
  0x2d   :  { %143 = vmatpush1.msra.mxu0 %v112_v7  ;;  %569 = vmatpush3.msra.mxu1 %v117_v17  ;;  %v111_v22 = vld [vmem:[#allocation7 + $0x130] sm:$0xff]  ;;  %v108_v25 = vld [vmem:[#allocation7 + $0x118] sm:$0xff]  ;;  %v89_v27 = vld [vmem:[#allocation7 + $0x80] sm:$0xff] }
  0x2e   :  { %144 = vmatprep.subr.mxu0 %v110_v8  ;;  %570 = vmatprep.subr.mxu1 %v747_v0  ;;  %v91_v26 = vld [vmem:[#allocation7 + $0x90] sm:$0xff]  ;;  %v105_v28 = vld [vmem:[#allocation7 + $0x100] sm:$0xff]  ;;  %v88_v29 = vld [vmem:[#allocation7 + $0x78] sm:$0xff] }
  0x2f   :  { %145 = vmatpush1.msra.mxu0 %v109_v9  ;;  %571 = vmatpush3.msra.mxu1 %v114_v19  ;;  %v86_v30 = vld [vmem:[#allocation7 + $0x68] sm:$0xff]  ;;  %v85_v32 = vld [vmem:[#allocation7 + $0x60] sm:$0xff]  ;;  %v83_v33 = vld [vmem:[#allocation7 + $0x50] sm:$0xff] }
  0x30   :  { %146 = vmatprep.subr.mxu0 %v107_v10  ;;  %572 = vmatprep.subr.mxu1 %v747_v0  ;;  %v102_v31 = vld [vmem:[#allocation7 + $0xe8] sm:$0xff]  ;;  %v99_v34 = vld [vmem:[#allocation7 + $0xd0] sm:$0xff]  ;;  %v80_v36 = vld [vmem:[#allocation7 + $0x38] sm:$0xff] }
  0x31   :  { %147 = vmatpush1.msra.mxu0 %v106_v11  ;;  %573 = vmatpush3.msra.mxu1 %v111_v22  ;;  %v82_v35 = vld [vmem:[#allocation7 + $0x48] sm:$0xff]  ;;  %v96_v37 = vld [vmem:[#allocation7 + $0xb8] sm:$0xff]  ;;  %v79_v38 = vld [vmem:[#allocation7 + $0x30] sm:$0xff] }
  0x32   :  { %148 = vmatprep.subr.mxu0 %v104_v12  ;;  %574 = vmatprep.subr.mxu1 %v747_v0  ;;  %v77_v39 = vld [vmem:[#allocation7 + $0x20] sm:$0xff]  ;;  %v76_v41 = vld [vmem:[#allocation7 + $0x18] sm:$0xff]  ;;  %v74_v42 = vld [vmem:[#allocation7 + $0x8] sm:$0xff] }
  0x33   :  { %149 = vmatpush1.msra.mxu0 %v103_v13  ;;  %575 = vmatpush3.msra.mxu1 %v108_v25  ;;  %v93_v40 = vld [vmem:[#allocation7 + $0xa0] sm:$0xff]  ;;  %v90_v43 = vld [vmem:[#allocation7 + $0x88] sm:$0xff]  ;;  %v72_v45 = vld [vmem:[%s859_s0] sm:$0xff] }
  0x34   :  { %150 = vmatprep.subr.mxu0 %v101_v14  ;;  %576 = vmatprep.subr.mxu1 %v747_v0  ;;  %v73_v44 = vld [vmem:[#allocation7] sm:$0xff]  ;;  %v340_v46 = vld [vmem:[#allocation9 + $0x170] sm:$0xff]  ;;  %v339_v47 = vld [vmem:[#allocation9 + $0x168] sm:$0xff] }
  0x35   :  { %151 = vmatpush1.msra.mxu0 %v100_v16  ;;  %577 = vmatpush3.msra.mxu1 %v105_v28  ;;  %v87_v48 = vld [vmem:[#allocation7 + $0x70] sm:$0xff]  ;;  %v337_v49 = vld [vmem:[#allocation9 + $0x158] sm:$0xff]  ;;  %v334_v52 = vld [vmem:[#allocation9 + $0x140] sm:$0xff] }
  0x36   :  { %152 = vmatprep.subr.mxu0 %v98_v18  ;;  %578 = vmatprep.subr.mxu1 %v747_v0  ;;  %v336_v50 = vld [vmem:[#allocation9 + $0x150] sm:$0xff]  ;;  %v84_v51 = vld [vmem:[#allocation7 + $0x58] sm:$0xff]  ;;  %v81_v54 = vld [vmem:[#allocation7 + $0x40] sm:$0xff] }
  0x37   :  { %153 = vmatpush1.msra.mxu0 %v97_v20  ;;  %579 = vmatpush3.msra.mxu1 %v102_v31  ;;  %v333_v53 = vld [vmem:[#allocation9 + $0x138] sm:$0xff]  ;;  %v331_v55 = vld [vmem:[#allocation9 + $0x128] sm:$0xff]  ;;  %v330_v56 = vld [vmem:[#allocation9 + $0x120] sm:$0xff] }
  0x38   :  { %154 = vmatprep.subr.mxu0 %v95_v21  ;;  %580 = vmatprep.subr.mxu1 %v747_v0  ;;  %v78_v57 = vld [vmem:[#allocation7 + $0x28] sm:$0xff]  ;;  %v328_v58 = vld [vmem:[#allocation9 + $0x110] sm:$0xff]  ;;  %v325_v61 = vld [vmem:[#allocation9 + $0xf8] sm:$0xff] }
  0x39   :  { %155 = vmatpush1.msra.mxu0 %v94_v23  ;;  %581 = vmatpush3.msra.mxu1 %v99_v34  ;;  %v327_v59 = vld [vmem:[#allocation9 + $0x108] sm:$0xff]  ;;  %v75_v60 = vld [vmem:[#allocation7 + $0x10] sm:$0xff]  ;;  %v322_v63 = vld [vmem:[#allocation9 + $0xe0] sm:$0xff] }
  0x3a   :  { %156 = vmatprep.subr.mxu0 %v92_v24  ;;  %582 = vmatprep.subr.mxu1 %v747_v0  ;;  %v324_v62 = vld [vmem:[#allocation9 + $0xf0] sm:$0xff]  ;;  %v321_v1 = vld [vmem:[#allocation9 + $0xd8] sm:$0xff]  ;;  %v319_v3 = vld [vmem:[#allocation9 + $0xc8] sm:$0xff] }
  0x3b   :  { %157 = vmatpush1.msra.mxu0 %v91_v26  ;;  %583 = vmatpush3.msra.mxu1 %v96_v37  ;;  %v341_v2 = vld [vmem:[#allocation9 + $0x178] sm:$0xff]  ;;  %v318_v4 = vld [vmem:[#allocation9 + $0xc0] sm:$0xff]  ;;  %v316_v6 = vld [vmem:[#allocation9 + $0xb0] sm:$0xff] }
  0x3c   :  { %158 = vmatprep.subr.mxu0 %v89_v27  ;;  %584 = vmatprep.subr.mxu1 %v747_v0  ;;  %v338_v5 = vld [vmem:[#allocation9 + $0x160] sm:$0xff]  ;;  %v315_v7 = vld [vmem:[#allocation9 + $0xa8] sm:$0xff]  ;;  %v313_v9 = vld [vmem:[#allocation9 + $0x98] sm:$0xff] }
  0x3d   :  { %159 = vmatpush1.msra.mxu0 %v88_v29  ;;  %585 = vmatpush3.msra.mxu1 %v93_v40  ;;  %v335_v8 = vld [vmem:[#allocation9 + $0x148] sm:$0xff]  ;;  %v312_v10 = vld [vmem:[#allocation9 + $0x90] sm:$0xff]  ;;  %v310_v12 = vld [vmem:[#allocation9 + $0x80] sm:$0xff]  ;;  %v123_v40 = vlaneseq }
  0x3e   :  { %160 = vmatprep.subr.mxu0 %v86_v30  ;;  %586 = vmatprep.subr.mxu1 %v747_v0  ;;  %v332_v11 = vld [vmem:[#allocation9 + $0x130] sm:$0xff]  ;;  %v309_v13 = vld [vmem:[#allocation9 + $0x78] sm:$0xff]  ;;  %v307_v15 = vld [vmem:[#allocation9 + $0x68] sm:$0xff] }
  0x3f   :  { %161 = vmatpush1.msra.mxu0 %v85_v32  ;;  %587 = vmatpush3.msra.mxu1 %v90_v43  ;;  %v329_v14 = vld [vmem:[#allocation9 + $0x118] sm:$0xff]  ;;  %v306_v16 = vld [vmem:[#allocation9 + $0x60] sm:$0xff]  ;;  %v304_v18 = vld [vmem:[#allocation9 + $0x50] sm:$0xff] }
  0x40   :  { %162 = vmatprep.subr.mxu0 %v83_v33  ;;  %588 = vmatprep.subr.mxu1 %v747_v0  ;;  %v326_v17 = vld [vmem:[#allocation9 + $0x100] sm:$0xff]  ;;  %v303_v19 = vld [vmem:[#allocation9 + $0x48] sm:$0xff]  ;;  %v301_v21 = vld [vmem:[#allocation9 + $0x38] sm:$0xff] }
  0x41   :  { %163 = vmatpush1.msra.mxu0 %v82_v35  ;;  %589 = vmatpush3.msra.mxu1 %v87_v48  ;;  %v323_v20 = vld [vmem:[#allocation9 + $0xe8] sm:$0xff]  ;;  %v300_v22 = vld [vmem:[#allocation9 + $0x30] sm:$0xff]  ;;  %v298_v24 = vld [vmem:[#allocation9 + $0x20] sm:$0xff] }
  0x42   :  { %164 = vmatprep.subr.mxu0 %v80_v36  ;;  %590 = vmatprep.subr.mxu1 %v747_v0  ;;  %v320_v23 = vld [vmem:[#allocation9 + $0xd0] sm:$0xff]  ;;  %v297_v25 = vld [vmem:[#allocation9 + $0x18] sm:$0xff]  ;;  %v295_v27 = vld [vmem:[#allocation9 + $0x8] sm:$0xff] }
  0x43   :  { %165 = vmatpush1.msra.mxu0 %v79_v38  ;;  %591 = vmatpush3.msra.mxu1 %v84_v51  ;;  %v317_v26 = vld [vmem:[#allocation9 + $0xb8] sm:$0xff]  ;;  %v294_v28 = vld [vmem:[#allocation9] sm:$0xff]  ;;  %v311_v31 = vld [vmem:[#allocation9 + $0x88] sm:$0xff] }
  0x44   :  { %166 = vmatprep.subr.mxu0 %v77_v39  ;;  %592 = vmatprep.subr.mxu1 %v747_v0  ;;  %v314_v29 = vld [vmem:[#allocation9 + $0xa0] sm:$0xff]  ;;  %v832_v30 = vld [vmem:[#allocation4] sm:$0xff]  ;;  %v308_v33 = vld [vmem:[#allocation9 + $0x70] sm:$0xff] }
  0x45   :  { %167 = vmatpush1.msra.mxu0 %v76_v41  ;;  %593 = vmatpush3.msra.mxu1 %v81_v54  ;;  %v293_v32 = vld [vmem:[%s860_s1] sm:$0xff]  ;;  %v302_v35 = vld [vmem:[#allocation9 + $0x40] sm:$0xff]  ;;  %v299_v36 = vld [vmem:[#allocation9 + $0x28] sm:$0xff]  ;;  %v124_v41 = vshrl.u32 %v123_v40, 7 }
  0x46   :  { %168 = vmatprep.subr.mxu0 %v74_v42  ;;  %594 = vmatprep.subr.mxu1 %v747_v0  ;;  %v305_v34 = vld [vmem:[#allocation9 + $0x58] sm:$0xff]  ;;  %v296_v37 = vld [vmem:[#allocation9 + $0x10] sm:$0xff] }
  0x47   :  { %169 = vmatpush1.msra.mxu0 %v73_v44  ;;  %595 = vmatpush3.msra.mxu1 %v78_v57  ;;  %v125_v42 = vsub.s32 0, %v124_v41  ;;  %v121_v43 = vld [vmem:[%s863_s4] sm:$0x7] }
  0x48   :  { %203 = vmatmul.mubr.f32.vlgmr.msra.gmra.mxu0 %v72_v45  ;;  %342 = vmatprep.subr.mxu0 %v340_v46  ;;  %v129_v46 = vsub.s32 1, %v124_v41 }
  0x49   :  { %343 = vmatpush1.msra.mxu0 %v339_v47  ;;  %596 = vmatprep.subr.mxu1 %v747_v0 }
  0x4a   :  { %344 = vmatprep.subr.mxu0 %v337_v49  ;;  %597 = vmatpush3.msra.mxu1 %v75_v60  ;;  %v130_v49 = vrot.slane %v121_v43, %v129_v46 }
  0x4b   :  { %345 = vmatpush1.msra.mxu0 %v336_v50  ;;  %601 = vmatprep.subr.mxu1 %v747_v0 }
  0x4c   :  { %346 = vmatprep.subr.mxu0 %v334_v52  ;;  %599 = vmatmul.mubr.f32.vlgmr.msra.gmra.mxu1 %v72_v45  ;;  %v126_v45 = vrot.slane %v121_v43, %v125_v42 }
  0x4d   :  { %347 = vmatpush1.msra.mxu0 %v333_v53  ;;  %406 = vmatprep.mubr.f32.mxu0 %v747_v0 }
  0x4e   :  { %348 = vmatprep.subr.mxu0 %v331_v55  ;;  %602 = vmatpush3.msra.mxu1 %v341_v2 }
  0x4f   :  { %349 = vmatpush1.msra.mxu0 %v330_v56  ;;  %603 = vmatprep.subr.mxu1 %v747_v0 }
  0x50   :  { %350 = vmatprep.subr.mxu0 %v328_v58  ;;  %604 = vmatpush3.msra.mxu1 %v338_v5 }
  0x51   :  { %351 = vmatpush1.msra.mxu0 %v327_v59  ;;  %605 = vmatprep.subr.mxu1 %v747_v0 }
  0x52   :  { %352 = vmatprep.subr.mxu0 %v325_v61  ;;  %606 = vmatpush3.msra.mxu1 %v335_v8  ;;  %v133_v61 = vsub.s32 2, %v124_v41 }
  0x53   :  { %353 = vmatpush1.msra.mxu0 %v324_v62  ;;  %607 = vmatprep.subr.mxu1 %v747_v0  ;;  %v529_v62 = vld [vmem:[%s865_s6] ss:$0 sm:$0xff]  ;;  %s716_s6 = scalar_lea.vmem %s520_s21, 128 }
  0x54   :  { %354 = vmatprep.subr.mxu0 %v322_v63  ;;  %608 = vmatpush3.msra.mxu1 %v332_v11  ;;  %p717_p1 = scmp.ne.s32.totalorder %s520_s21, %s716_s6  ;;  %p722_p3 = scmp.lt.s32.totalorder %s716_s6, %s716_s6 }
  0x55   :  { %355 = vmatpush1.msra.mxu0 %v321_v1  ;;  %609 = vmatprep.subr.mxu1 %v747_v0  ;;  %v134_v1 = vrot.slane %v121_v43, %v133_v61 }
  0x56   :  { %356 = vmatprep.subr.mxu0 %v319_v3  ;;  %610 = vmatpush3.msra.mxu1 %v329_v14  ;;  %p723_p4 = por %p722_p3, %p721_p2 }
  0x57   :  { %357 = vmatpush1.msra.mxu0 %v318_v4  ;;  %611 = vmatprep.subr.mxu1 %v747_v0 }
  0x58   :  { %358 = vmatprep.subr.mxu0 %v316_v6  ;;  %612 = vmatpush3.msra.mxu1 %v326_v17  ;;  %p724_p5 = pnand %p723_p4, %p717_p1 }
  0x59   :  { %359 = vmatpush1.msra.mxu0 %v315_v7  ;;  %613 = vmatprep.subr.mxu1 %v747_v0 }
  0x5a   :  { %360 = vmatprep.subr.mxu0 %v313_v9  ;;  %614 = vmatpush3.msra.mxu1 %v323_v20 }
  0x5b   :  { %361 = vmatpush1.msra.mxu0 %v312_v10  ;;  %615 = vmatprep.subr.mxu1 %v747_v0 }
  0x5c   :  { %362 = vmatprep.subr.mxu0 %v310_v12  ;;  %616 = vmatpush3.msra.mxu1 %v320_v23 }
  0x5d   :  { %363 = vmatpush1.msra.mxu0 %v309_v13  ;;  %617 = vmatprep.subr.mxu1 %v747_v0 }
  0x5e   :  { %364 = vmatprep.subr.mxu0 %v307_v15  ;;  %618 = vmatpush3.msra.mxu1 %v317_v26 }
  0x5f   :  { %365 = vmatpush1.msra.mxu0 %v306_v16  ;;  %619 = vmatprep.subr.mxu1 %v747_v0 }
  0x60   :  { %366 = vmatprep.subr.mxu0 %v304_v18  ;;  %620 = vmatpush3.msra.mxu1 %v314_v29 }
  0x61   :  { %367 = vmatpush1.msra.mxu0 %v303_v19  ;;  %621 = vmatprep.subr.mxu1 %v747_v0 }
  0x62   :  { %368 = vmatprep.subr.mxu0 %v301_v21  ;;  %622 = vmatpush3.msra.mxu1 %v311_v31 }
  0x63   :  { %369 = vmatpush1.msra.mxu0 %v300_v22  ;;  %633 = vmatprep.mubr.msk.f32.mxu1 %vm748_vm0, %v747_v0 }
  0x64   :  { %370 = vmatprep.subr.mxu0 %v298_v24  ;;  %623 = vmatprep.subr.mxu1 %v747_v0 }
  0x65   :  { %371 = vmatpush1.msra.mxu0 %v297_v25  ;;  %504 = vperm.xlu0 %645, %v293_v32  }
  0x66   :  { %372 = vmatprep.subr.mxu0 %v295_v27  ;;  %624 = vmatpush3.msra.mxu1 %v308_v33 }
  0x67   :  { %373 = vmatpush1.msra.mxu0 %v294_v28  ;;  %625 = vmatprep.subr.mxu1 %v747_v0 }
  0x68   :  { %407 = vmatmul.mubr.f32.vlgmr.msra.gmra.mxu0 %v832_v30  ;;  %626 = vmatpush3.msra.mxu1 %v305_v34 }
  0x69   :  { %627 = vmatprep.subr.mxu1 %v747_v0 }
  0x6a   :  { %628 = vmatpush3.msra.mxu1 %v302_v35 }
  0x6b   :  { %629 = vmatprep.subr.mxu1 %v747_v0 }
  0x6c   :  { %630 = vmatpush3.msra.mxu1 %v299_v36 }
  0x6d   :  { %631 = vmatprep.subr.mxu1 %v747_v0 }
  0x6e   :  { %632 = vmatpush3.msra.mxu1 %v296_v37 }
  0x6f   :  { %634 = vmatmul.mubr.f32.vlgmr.msra.gmra.mxu1 %v832_v30 }
  0xe0   :  { %v505_v9 = vpop.permute.xlu0 %504 }
 0x108   :  { %v204_v44 = vpop.f32.mrf.mxu0 }
 0x109   :  { %v205_v48 = vadd.f32 %v204_v44, %v126_v45 }
 0x10a   :  { %v206_v47 = vpop.f32.mrf.mxu0 }
 0x10b   :  { %v207_v52 = vadd.f32 %v206_v47, %v130_v49 }
 0x10c   :  { %v275_v38 = vpop.f32.mrf.mxu1 }
 0x10d   :  { %v276_v4 = vadd.f32 %v275_v38, %v134_v1 }
 0x10e   :  { %v600_v39 = vpop.f32.mrf.mxu1 }
 0x128   :  { %v408_v50 = vpop.f32.mrf.mxu0 }
 0x129   :  { %v483_v0 = vadd.f32 %v408_v50, %v205_v48 }
 0x12a   :  { %v410_v51 = vpop.f32.mrf.mxu0 }
 0x12b   :  { %v530_v53 = vmul.f32 -1.442695, %v483_v0  ;;  %v490_v54 = vadd.f32 %v410_v51, %v207_v52 }
 0x12d   :  { %646 = vpow2.f32 %v530_v53  ;;  %v531_v55 = vmul.f32 -1.442695, %v490_v54 }
 0x12f   :  { %v479_v56 = vpop.f32.mrf.mxu1  ;;  %648 = vpow2.f32 %v531_v55 }
 0x130   :  { %v497_v2 = vadd.f32 %v529_v62, %v479_v56 }
 0x131   :  { %v635_v57 = vpop.f32.mrf.mxu1 }
 0x13a   :  { %v647_v58 = vpop.eup %646 }
 0x13b   :  { %v487_v59 = vadd.f32 1.0, %v647_v58 }
 0x13c   :  { %v649_v60 = vpop.eup %648 }
 0x13d   :  { %650 = vrcp.f32 %v487_v59  ;;  %v494_v63 = vadd.f32 1.0, %v649_v60 }
 0x13f   :  { %652 = vrcp.f32 %v494_v63 }
 0x14a   :  { %v651_v3 = vpop.eup %650 }
 0x14b   :  { %v498_v5 = vmul.f32 %v651_v3, %v497_v2 }
 0x14c   :  { %v653_v7 = vpop.eup %652 }
 0x14d   :  { %v499_v6 = vadd.f32 %v498_v5, %v276_v4  ;;  %v501_v8 = vsub.f32 1.0, %v653_v7 }
 0x14f   :  { %654 = vtanh.f32 %v499_v6  ;;  %v507_v11 = vmul.f32 %v505_v9, %v501_v8 }
 0x15c   :  { %v655_v10 = vpop.eup %654 }
 0x15d   :  { %v508_v12 = vsub.f32 %v655_v10, %v832_v30 }
 0x15f   :  { %v509_v13 = vmul.f32 %v508_v12, %v507_v11 }
 0x161   :  { %v510_v14 = vadd.f32 %v509_v13, %v832_v30 }
 0x163   :  { %511 = vst [vmem:[#allocation10] sm:$0xff] %v510_v14 }
 0x164   :  { %727 = shalt.err (!%p724_p5)
}
 0x165   :  { %522 = dma.vmem_to_hbm [thread:$0]  %s520_s21, 128, %s866_s7, [#allocation6]  }
 0x166   :  { %740 = dma.done.wait [#allocation6], 128  }
 0x167   :  { %741 = vsyncadd [#allocation6], 4294967168 }
 0x168   :  { %526 = vsyncpa [#allocation5], 1 }
 0x169   :  { %527 = vsyncpa [#allocation8], 1 }
 0x16a   :  { %528 = vsyncpa [#allocation6], 1 }

</bundles_post_ra>
